<compile_context>
chip_gen: v7x
topology: tpu7x:2x2x1
jax: 0.10.0
libtpu: 0.0.40
codegen_flags: <defaults>
</compile_context>

<pallas_src>
import functools

import jax
import jax.numpy as jnp
from jax.experimental import pallas as pl
from jax.experimental.pallas import tpu as pltpu

_MIB = 1024 * 1024

# Problems whose whole f32 working set (x, w, b, out + one (M,N) temporary)
# fits comfortably in VMEM skip tiling entirely.  24 MiB is safe on every
# generation (v7x: 64 MiB physical VMEM per TensorCore; v5e/v6e: 128 MiB).
_SMALL_LIMIT_BYTES = 24 * _MIB


def _round_up(a, b):
    return (a + b - 1) // b * b


def _small_footprint_bytes(M, K, N):
    # x, w, bias, out, plus one (M, N) f32 temporary for the MXU result.
    return 4 * (M * K + K * N + 2 * M * N + N)


def _auto_tiles():
    """Generation-specific default tiles (HBM-roofline driven).

    Arithmetic intensity of the K loop is ~tm*tn/(tm+tn) FLOP/byte (bf16):
      v5e ridge ~240 FLOP/B -> 512x512 tiles suffice
      v6e ridge ~600 FLOP/B -> 1024x1024
      v7x ridge ~310 FLOP/B -> 768x1024 (and only 64 MiB VMEM per core)
    """
    kind = ""
    try:
        kind = jax.devices()[0].device_kind.lower()
    except Exception:  # defensive: fall back to the universally safe choice
        pass
    if "v6" in kind:
        return 1024, 1024, 1024
    if "v7" in kind or "7x" in kind:
        return 768, 1024, 1024
    return 512, 512, 1024  # v5e / unknown


# ---------------------------------------------------------------------------
# Small / mid-size fast path: single block, no grid, no pipelining overhead.
# ---------------------------------------------------------------------------
def _addmm_small_kernel(x_ref, w_ref, b_ref, o_ref):
    # f32 operands: at these sizes the kernel is overhead/DMA-bound, so keep
    # full addmm precision instead of bf16 operands.
    acc = jnp.dot(x_ref[...], w_ref[...], preferred_element_type=jnp.float32)
    o_ref[...] = (acc + b_ref[...]).astype(o_ref.dtype)


def _addmm_small(x, w, b):
    M, K = x.shape
    _, N = w.shape
    return pl.pallas_call(
        _addmm_small_kernel,
        out_shape=jax.ShapeDtypeStruct((M, N), jnp.float32),
        compiler_params=pltpu.CompilerParams(
            # The whole-array block can be up to ~24 MiB; raise the scoped
            # VMEM budget well above the 16/32 MiB defaults but keep it under
            # v7x's 64 MiB physical VMEM.
            vmem_limit_bytes=48 * _MIB),
        cost_estimate=pl.CostEstimate(
            flops=2 * M * N * K,
            transcendentals=0,
            bytes_accessed=4 * (M * K + K * N + M * N + N)),
    )(x, w, b)


# ---------------------------------------------------------------------------
# Tiled path: 3-D grid, f32 accumulator scratch, bias fused into finalize.
# ---------------------------------------------------------------------------
def _addmm_tiled_kernel(x_ref, w_ref, b_ref, o_ref, acc_ref):
    k = pl.program_id(2)
    last = pl.num_programs(2) - 1

    # One MXU pass per grid step, f32 accumulation.
    part = jnp.dot(x_ref[...], w_ref[...], preferred_element_type=jnp.float32)

    @pl.when(k == 0)
    def _init():
        acc_ref[...] = jnp.zeros_like(acc_ref)

    # Middle K steps: accumulate only -> inner loop is MXU + one acc RMW.
    @pl.when(k != last)
    def _accumulate():
        acc_ref[...] += part

    # Last K step: fold the final partial product and the bias directly into
    # the output store, skipping one full f32 accumulator store per tile
    # (the vst slot is the unit closest to saturation on v6e/v7x).
    @pl.when(k == last)
    def _finalize():
        o_ref[...] = (acc_ref[...] + part + b_ref[...]).astype(o_ref.dtype)


def _addmm_tiled(x, w, b, *, tm, tn, tk, operand_dtype=jnp.bfloat16):
    M, K = x.shape
    _, N = w.shape

    # Tiles: clamp to the (rounded-up) problem, multiples of 128 so both the
    # (8,128)/(16,128) layout rules and the 128x128 MXU stay aligned.
    tm = min(tm, _round_up(M, 128))
    tn = min(tn, _round_up(N, 128))
    tk = min(tk, _round_up(K, 128))

    gi, gj = pl.cdiv(M, tm), pl.cdiv(N, tn)
    # Keep >= 2 independent output tiles so the ("parallel","parallel") axes
    # can feed both TensorCores on v7x even for tall/skinny problems.
    if gi * gj < 2:
        if N >= 256:
            tn = _round_up(pl.cdiv(N, 2), 128)
        elif M >= 256:
            tm = _round_up(pl.cdiv(M, 2), 128)
        gi, gj = pl.cdiv(M, tm), pl.cdiv(N, tn)

    # Only K must be zero-padded (garbage in a K overhang would contaminate
    # real outputs).  M/N edge blocks are handled by Pallas' clipped boundary
    # reads/writes: the affected rows/cols lie beyond (M, N) and are dropped.
    Kp = _round_up(K, tk)
    gk = Kp // tk

    xp = x if x.dtype == operand_dtype else x.astype(operand_dtype)
    wp = w if w.dtype == operand_dtype else w.astype(operand_dtype)
    if Kp != K:
        xp = jnp.pad(xp, ((0, 0), (0, Kp - K)))
        wp = jnp.pad(wp, ((0, Kp - K), (0, 0)))
    bp = b.astype(jnp.float32)

    opsz = jnp.dtype(operand_dtype).itemsize
    vmem_need = (2 * (tm * tk + tk * tn) * opsz   # double-buffered x, w blocks
                 + 2 * tm * tn * 4                # double-buffered out block
                 + tm * tn * 4                    # f32 accumulator scratch
                 + 2 * tn * 4)                    # bias block
    vmem_limit = min(max(vmem_need + 4 * _MIB, 32 * _MIB), 56 * _MIB)

    grid = (gi, gj, gk)

    return pl.pallas_call(
        _addmm_tiled_kernel,
        out_shape=jax.ShapeDtypeStruct((M, N), jnp.float32),
        grid_spec=pltpu.PrefetchScalarGridSpec(
            num_scalar_prefetch=0,
            grid=grid,
            in_specs=[
                pl.BlockSpec((tm, tk), lambda i, j, k: (i, k)),
                pl.BlockSpec((tk, tn), lambda i, j, k: (k, j)),
                pl.BlockSpec((1, tn), lambda i, j, k: (0, j)),
            ],
            out_specs=pl.BlockSpec((tm, tn), lambda i, j, k: (i, j)),
            scratch_shapes=[pltpu.VMEM((tm, tn), jnp.float32)],
        ),
        compiler_params=pltpu.CompilerParams(
            # M/N tiles are independent -> shard across v7x's 2 TensorCores;
            # K carries the accumulator -> arbitrary (sequential, innermost).
            dimension_semantics=("parallel", "parallel", "arbitrary"),
            vmem_limit_bytes=vmem_limit,
        ),
        cost_estimate=pl.CostEstimate(
            flops=2 * M * N * Kp,
            transcendentals=0,
            # Real traffic: x is re-read once per N tile, w once per M tile.
            bytes_accessed=(opsz * (M * Kp * gj + Kp * N * gi)
                            + 4 * (M * N + N * gi)),
        ),
    )(xp, wp, bp)


@functools.partial(jax.jit,
                   static_argnames=("tm", "tn", "tk", "operand_dtype"))
def funcmodule_forward(x, w, b, *, tm=None, tn=None, tk=None,
                       operand_dtype=jnp.bfloat16):
    """FuncModule.forward(x) with f = addmm and params = (w, b).

    operand_dtype=jnp.float32 keeps torch.addmm f32 operand semantics on the
    tiled path (slower MXU passes); the default bf16 halves HBM traffic and
    uses the MXU fast path with f32 accumulation.
    """
    M, K = x.shape
    K2, N = w.shape
    assert K == K2 and b.shape == (1, N)
    if _small_footprint_bytes(M, K, N) <= _SMALL_LIMIT_BYTES:
        return _addmm_small(x, w, b)
    atm, atn, atk = _auto_tiles()
    tm = atm if tm is None else tm
    tn = atn if tn is None else tn
    tk = atk if tk is None else tk
    return _addmm_tiled(x, w, b, tm=tm, tn=tn, tk=tk,
                        operand_dtype=operand_dtype)


if __name__ == "__main__":
    key = jax.random.PRNGKey(0)
    ks = jax.random.split(key, 9)

    # --- 1. Operator-test shape: single-block fast path, f32 operands. ---
    M, K, N = 8, 32, 128
    x = jax.random.normal(ks[0], (M, K), dtype=jnp.float32)
    w = jax.random.normal(ks[1], (K, N), dtype=jnp.float32) * 0.05
    b = jax.random.normal(ks[2], (1, N), dtype=jnp.float32)
    out = funcmodule_forward(x, w, b)
    jax.block_until_ready(out)
    ref = jnp.dot(x, w, precision=jax.lax.Precision.HIGHEST) + b
    assert out.shape == (M, N)
    assert jnp.allclose(out, ref, atol=5e-3, rtol=5e-3)

    # --- 2. Mid-size, non-tile-multiple shape: now also the single-block
    #        path (footprint ~5 MiB << 24 MiB), f32 end-to-end, no pad/cast
    #        or output-slice HBM passes. ---
    Mm, Km, Nm = 500, 768, 512
    xm = jax.random.normal(ks[3], (Mm, Km), dtype=jnp.float32)
    wm = jax.random.normal(ks[4], (Km, Nm), dtype=jnp.float32) * 0.05
    bm = jax.random.normal(ks[5], (1, Nm), dtype=jnp.float32)
    out_m = funcmodule_forward(xm, wm, bm)
    jax.block_until_ready(out_m)
    ref_m = jnp.dot(xm, wm, precision=jax.lax.Precision.HIGHEST) + bm
    assert out_m.shape == (Mm, Nm)
    assert jnp.allclose(out_m, ref_m, atol=3e-2, rtol=3e-2)

    # --- 3. Force the tiled bf16 path on the same problem: grid (2, 2, 2)
    #        with a partial M edge block, K zero-padding (768 -> 1024),
    #        K-loop accumulation and the fused bias finalize. ---
    out_t = _addmm_tiled(xm, wm, bm, tm=256, tn=256, tk=512)
    jax.block_until_ready(out_t)
    ref_t = jnp.dot(xm.astype(jnp.bfloat16), wm.astype(jnp.bfloat16),
                    preferred_element_type=jnp.float32) + bm
    assert out_t.shape == (Mm, Nm)
    assert jnp.allclose(out_t, ref_t, atol=3e-2, rtol=3e-2)

    # --- 4. Tiled path with f32 operands (torch.addmm precision option). ---
    out_tf = _addmm_tiled(xm, wm, bm, tm=256, tn=256, tk=512,
                          operand_dtype=jnp.float32)
    jax.block_until_ready(out_tf)
    assert jnp.allclose(out_tf, ref_m, atol=3e-2, rtol=3e-2)

    # --- 5. Larger shape through the auto dispatch: exercises the
    #        generation-specific tile defaults on the tiled path. ---
    Ml, Kl, Nl = 1024, 2048, 1536
    xl = jax.random.normal(ks[6], (Ml, Kl), dtype=jnp.float32)
    wl = jax.random.normal(ks[7], (Kl, Nl), dtype=jnp.float32) * 0.02
    bl = jax.random.normal(ks[8], (1, Nl), dtype=jnp.float32)
    out_l = funcmodule_forward(xl, wl, bl)
    jax.block_until_ready(out_l)
    ref_l = jnp.dot(xl.astype(jnp.bfloat16), wl.astype(jnp.bfloat16),
                    preferred_element_type=jnp.float32) + bl
    assert out_l.shape == (Ml, Nl)
    assert jnp.allclose(out_l, ref_l, atol=5e-2, rtol=5e-2)

    print("KERNEL_OK")
</pallas_src>

<mosaic_0001>
module attributes {stable_mosaic.version = 11 : i64} {
  func.func @_addmm_small_kernel(%arg0: memref<8x32xf32, #tpu.memory_space<vmem>>, %arg1: memref<32x128xf32, #tpu.memory_space<vmem>>, %arg2: memref<1x128xf32, #tpu.memory_space<vmem>>, %arg3: memref<8x128xf32, #tpu.memory_space<vmem>>) attributes {dimension_semantics = [], scalar_prefetch = 0 : i64, scratch_operands = 0 : i64, tpu.core_type = #tpu.core_type<tc>} {
    %c0 = arith.constant 0 : index
    %c0_0 = arith.constant 0 : index
    %0 = vector.load %arg0[%c0, %c0_0] : memref<8x32xf32, #tpu.memory_space<vmem>>, vector<8x32xf32>
    %c0_1 = arith.constant 0 : index
    %c0_2 = arith.constant 0 : index
    %1 = vector.load %arg1[%c0_1, %c0_2] : memref<32x128xf32, #tpu.memory_space<vmem>>, vector<32x128xf32>
    %cst = arith.constant dense<0.000000e+00> : vector<8x128xf32>
    %2 = tpu.matmul %0, %1, %cst {dimension_numbers = #tpu.dot_dimension_numbers<[1], [0], [0], [1], [0, 0, 1, 1], [], []>} : vector<8x32xf32>, vector<32x128xf32>, vector<8x128xf32> -> vector<8x128xf32>
    %c0_3 = arith.constant 0 : index
    %c0_4 = arith.constant 0 : index
    %3 = vector.load %arg2[%c0_3, %c0_4] : memref<1x128xf32, #tpu.memory_space<vmem>>, vector<1x128xf32>
    %4 = vector.broadcast %3 : vector<1x128xf32> to vector<8x128xf32>
    %5 = arith.addf %2, %4 : vector<8x128xf32>
    %c0_5 = arith.constant 0 : index
    %c0_6 = arith.constant 0 : index
    %6 = vector.load %arg3[%c0_5, %c0_6] : memref<8x128xf32, #tpu.memory_space<vmem>>, vector<8x128xf32>
    tpu.vector_store %arg3[%c0_5, %c0_6], %5 {strides = array<i32>} : memref<8x128xf32, #tpu.memory_space<vmem>>, vector<8x128xf32>,
    return
  }
}

</mosaic_0001>

<bundles_post_ra>
// kernel: funcmodule_forward.1
= control target key start
LH: loop header
LB: loop body
LE: loop exit
PB: predicated region body
PF: predicated region fallthrough
CT: control target
= control target key end

     0   :  { %8 = vsyncpa [#allocation3], 0  ;;  %s322_s0 = inlined_call_operand.hbm [shape: f32[8,32], index: 0, kind: input, shape index: {}]   ;;  %s323_s1 = inlined_call_operand.hbm [shape: f32[32,128], index: 1, kind: input, shape index: {}]   ;;  %s324_s2 = inlined_call_operand.vmem [shape: f32[1,128], index: 2, kind: input, shape index: {}]   ;;  %s325_s3 = inlined_call_operand.hbm [shape: f32[8,128], index: 3, kind: output, shape index: {}]  }
   0x1   :  { %9 = vsyncpa [#allocation6], 0 }
   0x2   :  { %10 = vsyncpa [#allocation4], 0  ;;  %s248_s12 = smov [#allocation2]   ;;  %s249_s14 = smov [#allocation5]  }
   0x3   :  { %s17_s13 = sshll.u32 %s248_s12, 4  ;;  %s26_s15 = sshll.u32 %s249_s14, 4  ;;  %s18_s13 = int_to_ptr.vmem [resolvable:$true] %s17_s13  ;;  %s276_s15 = int_to_ptr.vmem [resolvable:$true] %s26_s15 }
   0x4   :  { %s176_s18 = scalar_lea.hbm %s322_s0, 128 }
   0x5   :  { %p177_p0 = scmp.ne.s32.totalorder %s322_s0, %s176_s18  ;;  %p180_p1 = scmp.lt.u32.totalorder %s176_s18, %s322_s0 }
   0x7   :  { %p182_p2 = pnand %p180_p1, %p177_p0 }
   0x9   :  { %185 = shalt.err (!%p182_p2)
}
   0xa   :  { %s186_s23 = scalar_lea.vmem %s18_s13, 128  ;;  %p191_p4 = scmp.lt.s32.totalorder %s18_s13, %s18_s13 }
   0xb   :  { %p187_p3 = scmp.ne.s32.totalorder %s18_s13, %s186_s23  ;;  %p192_p5 = scmp.lt.s32.totalorder %s186_s23, %s186_s23 }
   0xd   :  { %p193_p6 = por %p192_p5, %p191_p4 }
   0xf   :  { %p194_p7 = pnand %p193_p6, %p187_p3 }
  0x11   :  { %197 = shalt.err (!%p194_p7)
}
  0x12   :  { %20 = dma.hbm_to_vmem [thread:$0]  %s322_s0, 128, %s18_s13, [#allocation3]  }
  0x13   :  { %s198_s28 = scalar_lea.hbm %s323_s1, 512 }
  0x14   :  { %p199_p8 = scmp.ne.s32.totalorder %s323_s1, %s198_s28  ;;  %p202_p9 = scmp.lt.u32.totalorder %s198_s28, %s323_s1 }
  0x16   :  { %p204_p10 = pnand %p202_p9, %p199_p8 }
  0x18   :  { %207 = shalt.err (!%p204_p10)
}
  0x19   :  { %s208_s6 = scalar_lea.vmem %s276_s15, 512  ;;  %p213_p12 = scmp.lt.s32.totalorder %s276_s15, %s276_s15 }
  0x1a   :  { %p209_p11 = scmp.ne.s32.totalorder %s276_s15, %s208_s6  ;;  %p214_p13 = scmp.lt.s32.totalorder %s208_s6, %s208_s6 }
  0x1c   :  { %p215_p0 = por %p214_p13, %p213_p12 }
  0x1e   :  { %p216_p1 = pnand %p215_p0, %p209_p11 }
  0x20   :  { %219 = shalt.err (!%p216_p1)
}
  0x21   :  { %s250_s0 = smov 128   ;;  %s251_s7 = smov 8  }
  0x22   :  { %32 = dma.hbm_to_vmem [thread:$0]  %s323_s1, 512, %s276_s15, [#allocation6], %s250_s0, %s250_s0, %s251_s7  }
  0x23   :  { %242 = dma.done.wait [#allocation3], 128  }
  0x24   :  { %243 = vsyncadd [#allocation3], 4294967168 }
  0x25   :  { %244 = dma.done.wait [#allocation6], 512  }
  0x26   :  { %245 = vsyncadd [#allocation6], 4294966784  ;;  %v252_v0 = vmov 0.0|0.0   ;;  %vm253_vm0 = vmmov 0   ;;  %v254_v1 = vmov 0.0   ;;  %v42_v2 = vld [vmem:[#allocation5] sm:$0xff] }
  0x27   :  { %162 = vmatprep.subr.bf16.mxu0 %v252_v0  ;;  %159 = vmatprep.mubr.msk.f32.mxu0 %vm253_vm0, %v254_v1  ;;  %v43_v3 = vld [vmem:[#allocation5 + $0x8] sm:$0xff]  ;;  %v44_v4 = vld [vmem:[#allocation5 + $0x10] sm:$0xff]  ;;  %v45_v6 = vld [vmem:[#allocation5 + $0x18] sm:$0xff]  ;;  %vm53_vm1 = vcmask 261120   ;;  %s255_s11 = smov [#allocation7]  }
  0x28   :  { %v163_v5 = vpack.c.bf16 %v43_v3, %v42_v2  ;;  %v166_v7 = vpack.c.bf16 %v45_v6, %v44_v4  ;;  %v41_v8 = vld [vmem:[#allocation2] sm:$0xff]  ;;  %s134_s12 = sshll.u32 %s255_s11, 4  ;;  %s135_s12 = int_to_ptr.vmem [resolvable:$true] %s134_s12 }
  0x29   :  { %v144_v9 = vld [vmem:[%s324_s2] ss:$0 sm:$0xff]  ;;  %s220_s13 = scalar_lea.vmem %s135_s12, 128  ;;  %p225_p3 = scmp.lt.s32.totalorder %s135_s12, %s135_s12 }
  0x2a   :  { %164 = vmatpush3.bf16.msra.mxu0 %v163_v5  ;;  %p221_p2 = scmp.ne.s32.totalorder %s135_s12, %s220_s13  ;;  %p226_p4 = scmp.lt.s32.totalorder %s220_s13, %s220_s13 }
  0x2b   :  { %165 = vmatprep.subr.bf16.mxu0 %v252_v0 }
  0x2c   :  { %p227_p5 = por %p226_p4, %p225_p3 }
  0x2e   :  { %167 = vmatpush3.bf16.msra.mxu0 %v166_v7  ;;  %p228_p6 = pnand %p227_p5, %p221_p2 }
  0x31   :  { %160 = vmatmul.mubr.msk.f32.vlgmr.msra.gmra.mrb[0].mxu0 %vm53_vm1, %v41_v8 }
 0x104   :  { %v123_v10 = vpop.f32.mrb[0].mxu0 }
 0x105   :  { %v124_v11 = vadd.f32 %v144_v9, %v123_v10  ;;  %v161_v12 = vpop.f32.mrb[1].mxu0 }
 0x107   :  { %127 = vst [vmem:[#allocation7] sm:$0xff] %v124_v11 }
 0x108   :  { %231 = shalt.err (!%p228_p6)
}
 0x109   :  { %s232_s16 = scalar_lea.hbm %s325_s3, 128 }
 0x10a   :  { %p233_p7 = scmp.ne.s32.totalorder %s325_s3, %s232_s16  ;;  %p236_p8 = scmp.lt.u32.totalorder %s232_s16, %s325_s3 }
 0x10c   :  { %p238_p9 = pnand %p236_p8, %p233_p7 }
 0x10e   :  { %241 = shalt.err (!%p238_p9)
}
 0x10f   :  { %137 = dma.vmem_to_hbm [thread:$0]  %s135_s12, 128, %s325_s3, [#allocation4]  }
 0x110   :  { %246 = dma.done.wait [#allocation4], 128  }
 0x111   :  { %247 = vsyncadd [#allocation4], 4294967168 }
 0x112   :  { %141 = vsyncpa [#allocation3], 1 }
 0x113   :  { %142 = vsyncpa [#allocation6], 1 }
 0x114   :  { %143 = vsyncpa [#allocation4], 1 }

</bundles_post_ra>
